<compile_context>
chip_gen: v7x
topology: tpu7x:2x2x1
jax: 0.10.0
libtpu: 0.0.40
codegen_flags: <defaults>
</compile_context>

<pallas_src>
import functools

import jax
import jax.numpy as jnp
from jax.experimental import pallas as pl
from jax.experimental.pallas import tpu as pltpu


_ROLL_NUMPY_STYLE = None


def _roll_is_numpy_style() -> bool:
    """One-time on-device probe of pltpu.roll's rotation direction.

    Returns True if pltpu.roll(x, shift=1) follows np.roll semantics
    (out[i] = in[i-1]).  The main kernel adapts its shift sign to whatever
    the hardware primitive does, so conv correctness never depends on the
    direction convention.
    """
    global _ROLL_NUMPY_STYLE
    if _ROLL_NUMPY_STYLE is None:
        def kern(x_ref, o_ref):
            o_ref[...] = pltpu.roll(x_ref[...], shift=1, axis=1)

        x = jax.lax.broadcasted_iota(jnp.int32, (8, 128), 1)
        y = pl.pallas_call(
            kern, out_shape=jax.ShapeDtypeStruct((8, 128), jnp.int32))(x)
        _ROLL_NUMPY_STYLE = bool(int(y[0, 0]) == 127)
    return _ROLL_NUMPY_STYLE


def _basic_block_kernel(x_ref, w1_ref, b1_ref, w2_ref, b2_ref, out_ref,
                        *, H, W, roll_numpy_style):
    """Fused conv3x3+BN1+ReLU -> conv3x3+BN2 -> +residual -> ReLU (one image).

    x_ref:   (1, Cin, H*W)  f32   activation, flattened spatial on lanes
    w1_ref:  (9, Cm, Cin)   bf16  conv1 taps (t = kh*3+kw), BN1 scale folded
    b1_ref:  (Cm, 1)        f32   folded BN1 bias
    w2_ref:  (9, Cout, Cm)  bf16  conv2 taps, BN2 scale folded
    b2_ref:  (Cout, 1)      f32   folded BN2 bias
    out_ref: (1, Cout, H*W) f32
    """
    HW = H * W

    # Boundary masks (f32 0/1) for the 8 non-center taps, built once from a
    # 2-D iota and shared by both convs.
    pos = jax.lax.broadcasted_iota(jnp.int32, (1, HW), 1)
    row = pos // W
    col = pos - row * W
    masks = {}
    for dh in (-1, 0, 1):
        for dw in (-1, 0, 1):
            if dh == 0 and dw == 0:
                continue
            ok = ((row + dh >= 0) & (row + dh < H) &
                  (col + dw >= 0) & (col + dw < W))
            masks[(dh, dw)] = ok.astype(jnp.float32)

    def shift2d(a, dh, dw):
        # (C, H*W) spatially shifted by (dh, dw), zero beyond the image:
        # one lane roll (XLU) + one broadcast mask multiply (VPU).
        if dh == 0 and dw == 0:
            return a
        off = dh * W + dw
        sh = (-off) % HW if roll_numpy_style else off % HW
        return pltpu.roll(a, shift=sh, axis=1) * masks[(dh, dw)]

    def conv3x3(a, w_ref):
        # a: (Cin, H*W) f32 ; w_ref: (9, Co, Cin) bf16  ->  (Co, H*W) f32
        acc = None
        t = 0
        for dh in (-1, 0, 1):
            for dw in (-1, 0, 1):
                rhs = shift2d(a, dh, dw).astype(jnp.bfloat16)
                tap = jnp.dot(w_ref[t], rhs,
                              preferred_element_type=jnp.float32)
                acc = tap if acc is None else acc + tap
                t += 1
        return acc

    x = x_ref[0]                                                 # (Cin, H*W)
    y1 = jnp.maximum(conv3x3(x, w1_ref) + b1_ref[...], 0.0)      # (Cm, H*W)
    y2 = conv3x3(y1, w2_ref) + b2_ref[...] + x                   # residual
    out_ref[0] = jnp.maximum(y2, 0.0).astype(out_ref.dtype)


def basic_block_forward(x_nchw, params):
    """BasicBlock forward (stride=1, downsample=None). Input/output are NCHW."""
    w1, g1, b1, m1, v1, w2, g2, b2, m2, v2 = params
    eps = 1e-5

    # Fold eval-mode BN: scale goes into the conv weights, bias added in-kernel.
    s1 = g1 / jnp.sqrt(v1 + eps)
    o1 = b1 - m1 * s1
    s2 = g2 / jnp.sqrt(v2 + eps)
    o2 = b2 - m2 * s2

    N, Cin, H, W = x_nchw.shape
    Cm = w1.shape[3]
    Cout = w2.shape[3]
    assert Cin == Cout, "residual path requires inplanes == planes (no downsample)"
    HW = H * W

    # NCHW -> (N, C, H*W): contiguous trailing reshape, no data movement.
    x_flat = x_nchw.reshape(N, Cin, HW).astype(jnp.float32)

    # Pack weights as (9, Cout, Cin) bf16 with t = kh*3 + kw, BN scale folded.
    w1p = jnp.transpose(w1 * s1[None, None, None, :], (0, 1, 3, 2))
    w1p = w1p.reshape(9, Cm, Cin).astype(jnp.bfloat16)
    w2p = jnp.transpose(w2 * s2[None, None, None, :], (0, 1, 3, 2))
    w2p = w2p.reshape(9, Cout, Cm).astype(jnp.bfloat16)
    b1c = o1.reshape(Cm, 1).astype(jnp.float32)
    b2c = o2.reshape(Cout, 1).astype(jnp.float32)

    kernel = functools.partial(
        _basic_block_kernel, H=H, W=W,
        roll_numpy_style=_roll_is_numpy_style())

    out_flat = pl.pallas_call(
        kernel,
        out_shape=jax.ShapeDtypeStruct((N, Cout, HW), jnp.float32),
        grid_spec=pltpu.PrefetchScalarGridSpec(
            num_scalar_prefetch=0,
            grid=(N,),
            in_specs=[
                pl.BlockSpec((1, Cin, HW), lambda n: (n, 0, 0)),
                pl.BlockSpec((9, Cm, Cin), lambda n: (0, 0, 0)),
                pl.BlockSpec((Cm, 1), lambda n: (0, 0)),
                pl.BlockSpec((9, Cout, Cm), lambda n: (0, 0, 0)),
                pl.BlockSpec((Cout, 1), lambda n: (0, 0)),
            ],
            out_specs=pl.BlockSpec((1, Cout, HW), lambda n: (n, 0, 0)),
        ),
        compiler_params=pltpu.CompilerParams(
            dimension_semantics=("parallel",),
            vmem_limit_bytes=32 * 1024 * 1024,
        ),
    )(x_flat, w1p, b1c, w2p, b2c)

    # (N, Cout, H*W) -> NCHW: free trailing reshape (layout is already NCHW).
    return out_flat.reshape(N, Cout, H, W)


def basic_block_reference(x_nchw, params):
    """Pure-JAX (XLA) reference mirroring the PyTorch BasicBlock forward."""
    w1, g1, b1, m1, v1, w2, g2, b2, m2, v2 = params
    eps = 1e-5

    def bn(y, g, b, m, v):
        s = g / jnp.sqrt(v + eps)
        return y * s[None, :, None, None] + (b - m * s)[None, :, None, None]

    dn = jax.lax.conv_dimension_numbers(x_nchw.shape, w1.shape,
                                        ('NCHW', 'HWIO', 'NCHW'))
    y = jax.lax.conv_general_dilated(x_nchw, w1, (1, 1), 'SAME',
                                     dimension_numbers=dn)
    y = jnp.maximum(bn(y, g1, b1, m1, v1), 0.0)
    y = jax.lax.conv_general_dilated(y, w2, (1, 1), 'SAME',
                                     dimension_numbers=dn)
    y = bn(y, g2, b2, m2, v2) + x_nchw
    return jnp.maximum(y, 0.0)


def init_params(key, inplanes, planes):
    k1, k2 = jax.random.split(key)
    # conv weights in HWIO layout
    w1 = jax.random.normal(k1, (3, 3, inplanes, planes), jnp.float32) * 0.1
    w2 = jax.random.normal(k2, (3, 3, planes, planes), jnp.float32) * 0.1
    gamma1 = jnp.ones((planes,), jnp.float32)
    beta1 = jnp.zeros((planes,), jnp.float32)
    mean1 = jnp.zeros((planes,), jnp.float32)
    var1 = jnp.ones((planes,), jnp.float32)
    gamma2 = jnp.ones((planes,), jnp.float32)
    beta2 = jnp.zeros((planes,), jnp.float32)
    mean2 = jnp.zeros((planes,), jnp.float32)
    var2 = jnp.ones((planes,), jnp.float32)
    return (w1, gamma1, beta1, mean1, var1,
            w2, gamma2, beta2, mean2, var2)


if __name__ == "__main__":
    key = jax.random.PRNGKey(0)
    kx, kp = jax.random.split(key)

    N, C, Hs, Ws = 2, 4, 16, 16   # inplanes = planes = 4, stride = 1
    x = jax.random.normal(kx, (N, C, Hs, Ws), jnp.float32)
    params = init_params(kp, inplanes=C, planes=C)

    out = basic_block_forward(x, params)
    out = jax.block_until_ready(out)
    ref = basic_block_reference(x, params)

    assert out.shape == (N, C, Hs, Ws)
    assert bool(jnp.all(out >= 0.0))          # final ReLU
    max_err = float(jnp.max(jnp.abs(out - ref)))
    assert max_err < 5e-2, f"kernel vs pure-JAX reference max abs err = {max_err}"
    print("KERNEL_OK")
</pallas_src>

<mosaic_0001>
module attributes {stable_mosaic.version = 11 : i64} {
  func.func @kern(%arg0: memref<8x128xi32, #tpu.memory_space<vmem>>, %arg1: memref<8x128xi32, #tpu.memory_space<vmem>>) attributes {dimension_semantics = [], scalar_prefetch = 0 : i64, scratch_operands = 0 : i64, tpu.core_type = #tpu.core_type<tc>} {
    %c0 = arith.constant 0 : index
    %c0_0 = arith.constant 0 : index
    %0 = vector.load %arg0[%c0, %c0_0] : memref<8x128xi32, #tpu.memory_space<vmem>>, vector<8x128xi32>
    %c1_i32 = arith.constant 1 : i32
    %1 = tpu.dynamic_rotate %0 by %c1_i32 dim 1 : vector<8x128xi32>, i32 -> vector<8x128xi32>
    %c0_1 = arith.constant 0 : index
    %c0_2 = arith.constant 0 : index
    %2 = vector.load %arg1[%c0_1, %c0_2] : memref<8x128xi32, #tpu.memory_space<vmem>>, vector<8x128xi32>
    tpu.vector_store %arg1[%c0_1, %c0_2], %1 {strides = array<i32>} : memref<8x128xi32, #tpu.memory_space<vmem>>, vector<8x128xi32>,
    return
  }
}

</mosaic_0001>

<bundles_post_ra>
// kernel: tpu_custom_call.1
= control target key start
LH: loop header
LB: loop body
LE: loop exit
PB: predicated region body
PF: predicated region fallthrough
CT: control target
= control target key end

     0   :  { %6 = vsyncpa [#allocation3], 0  ;;  %s128_s0 = inlined_call_operand.hbm [shape: s32[8,128], index: 0, kind: input, shape index: {}]   ;;  %s129_s1 = inlined_call_operand.hbm [shape: s32[8,128], index: 1, kind: output, shape index: {}]  }
   0x1   :  { %7 = vsyncpa [#allocation4], 0  ;;  %s91_s6 = smov [#allocation2]   ;;  %s43_s10 = scalar_lea.hbm %s128_s0, 128 }
   0x2   :  { %s14_s7 = sshll.u32 %s91_s6, 4  ;;  %p44_p0 = scmp.ne.s32.totalorder %s128_s0, %s43_s10  ;;  %s15_s7 = int_to_ptr.vmem [resolvable:$true] %s14_s7 }
   0x3   :  { %p47_p1 = scmp.lt.u32.totalorder %s43_s10, %s128_s0 }
   0x5   :  { %p49_p2 = pnand %p47_p1, %p44_p0 }
   0x7   :  { %52 = shalt.err (!%p49_p2)
}
   0x8   :  { %s53_s15 = scalar_lea.vmem %s15_s7, 128  ;;  %p58_p4 = scmp.lt.s32.totalorder %s15_s7, %s15_s7 }
   0x9   :  { %p54_p3 = scmp.ne.s32.totalorder %s15_s7, %s53_s15  ;;  %p59_p5 = scmp.lt.s32.totalorder %s53_s15, %s53_s15 }
   0xb   :  { %p60_p6 = por %p59_p5, %p58_p4 }
   0xd   :  { %p61_p7 = pnand %p60_p6, %p54_p3 }
   0xf   :  { %64 = shalt.err (!%p61_p7)
}
  0x10   :  { %17 = dma.hbm_to_vmem [thread:$0]  %s128_s0, 128, %s15_s7, [#allocation3]  }
  0x11   :  { %87 = dma.done.wait [#allocation3], 128  }
  0x12   :  { %88 = vsyncadd [#allocation3], 4294967168  ;;  %v21_v0 = vld [vmem:[#allocation2] sm:$0xff]  ;;  %s92_s18 = smov 1   ;;  %s93_s19 = smov [#allocation5]  }
  0x13   :  { %22 = vrot.lane.b32.xlu0 %v21_v0, %s92_s18  ;;  %s31_s20 = sshll.u32 %s93_s19, 4  ;;  %s32_s20 = int_to_ptr.vmem [resolvable:$true] %s31_s20 }
  0x14   :  { %s65_s21 = scalar_lea.vmem %s32_s20, 128  ;;  %p70_p9 = scmp.lt.s32.totalorder %s32_s20, %s32_s20 }
  0x15   :  { %p66_p8 = scmp.ne.s32.totalorder %s32_s20, %s65_s21  ;;  %p71_p10 = scmp.lt.s32.totalorder %s65_s21, %s65_s21 }
  0x17   :  { %p72_p11 = por %p71_p10, %p70_p9 }
  0x19   :  { %p73_p12 = pnand %p72_p11, %p66_p8 }
  0x85   :  { %v23_v1 = vpop.permute.xlu0 %22 }
  0x86   :  { %24 = vst [vmem:[#allocation5] sm:$0xff] %v23_v1 }
  0x87   :  { %76 = shalt.err (!%p73_p12)
}
  0x88   :  { %s77_s0 = scalar_lea.hbm %s129_s1, 128 }
  0x89   :  { %p78_p13 = scmp.ne.s32.totalorder %s129_s1, %s77_s0  ;;  %p81_p0 = scmp.lt.u32.totalorder %s77_s0, %s129_s1 }
  0x8b   :  { %p83_p1 = pnand %p81_p0, %p78_p13 }
  0x8d   :  { %86 = shalt.err (!%p83_p1)
}
  0x8e   :  { %34 = dma.vmem_to_hbm [thread:$0]  %s32_s20, 128, %s129_s1, [#allocation4]  }
  0x8f   :  { %89 = dma.done.wait [#allocation4], 128  }
  0x90   :  { %90 = vsyncadd [#allocation4], 4294967168 }
  0x91   :  { %38 = vsyncpa [#allocation3], 1 }
  0x92   :  { %39 = vsyncpa [#allocation4], 1 }

</bundles_post_ra>
